<compile_context>
chip_gen: v5e
topology: v5e:2x2
jax: 0.10.0
libtpu: 0.0.40
codegen_flags: <defaults>
</compile_context>

<pallas_src>
import jax
import jax.numpy as jnp
from jax.experimental import pallas as pl
from jax.experimental.pallas import tpu as pltpu


def _linear_region_kernel(x_ref, w0_ref, wmid_ref, wlast_ref, out_ref):
    # x_ref    : (TB, N, I)      batch tile of the input, native layout
    # w0_ref   : (I, R)          first site tensor (resident)
    # wmid_ref : (n_mid, R, I*R) all middle site tensors, flattened, resident
    #                            wmid_ref[k][l, i*R + r] = Wk[l, i, r]
    # wlast_ref: (I, R)          last site tensor, transposed (resident)
    # out_ref  : (TB, 1)         per-example scalar output
    n_sites = x_ref.shape[1]
    feat = x_ref.shape[2]
    bond = w0_ref.shape[1]
    n_mid = n_sites - 2

    # site 0:  v[b, r] = sum_i x0[b, i] * W0[i, r]
    v = jnp.dot(x_ref[:, 0, :], w0_ref[...], preferred_element_type=jnp.float32)

    # middle sites (statically unrolled; n_mid is small):
    #   p[b, i*R + r] = sum_l v[b, l] * Wk[l, i, r]      -> one MXU matmul / site
    #   v[b, r]       = sum_i xk[b, i] * p[b, i*R + r]   -> feat VPU FMAs / site
    for k in range(n_mid):
        xk = x_ref[:, k + 1, :]                                           # (TB, I)
        p = jnp.dot(v, wmid_ref[k], preferred_element_type=jnp.float32)   # (TB, I*R)
        acc = xk[:, 0:1] * p[:, 0:bond]
        for i in range(1, feat):
            acc = acc + xk[:, i:i + 1] * p[:, i * bond:(i + 1) * bond]
        v = acc

    # last site + final contraction:
    #   u[b, l] = sum_i Wlast[l, i] * x_last[b, i]
    #   out[b]  = sum_r v[b, r] * u[b, r]   (MXU dot with a ones column instead of
    #             a lane reduce + sublane->lane XLU transpose)
    u = jnp.dot(x_ref[:, n_sites - 1, :], wlast_ref[...],
                preferred_element_type=jnp.float32)                       # (TB, R)
    ones_col = jnp.ones((bond, 1), jnp.float32)
    out_ref[...] = jnp.dot(v * u, ones_col, preferred_element_type=jnp.float32)


def linear_region_forward(x, w_first, w_mid, w_last, *, batch_tile=2048):
    """Pallas forward of LinearRegion.

    x       : (batch, n_sites, feat)
    w_first : (feat, bond)                  module_list[0].tensor
    w_mid   : (n_sites-2, bond, feat, bond) stacked middle .tensor's
    w_last  : (bond, feat)                  module_list[-1].tensor
    returns : (batch, 1) float32
    """
    batch, n_sites, feat = x.shape
    n_mid = w_mid.shape[0]
    bond = w_first.shape[1]
    assert n_sites == n_mid + 2 and n_sites >= 3, "need at least 3 sites"
    # TODO(synk): n_sites == 2 (no middle tensors) would need a special-cased kernel.
    assert w_mid.shape[1:] == (bond, feat, bond) and w_last.shape == (bond, feat)
    assert batch_tile % 128 == 0

    # ---- batch tiling: one tile for small batches; otherwise >= 2 tiles of a
    #      128-multiple (keeps both v7x TensorCores busy, all blocks legal) ------
    if batch <= 256:
        tb, b_pad = batch, batch
    else:
        half = -(-batch // 2)                              # cdiv(batch, 2)
        tb = min(batch_tile, ((half + 127) // 128) * 128)
        b_pad = -(-batch // tb) * tb
    nbt = b_pad // tb

    # ---- glue: casts, zero-pad of batch rows, free reshape / tiny transpose of
    #      weights only; x stays in native (B, N, I) layout (single HBM pass) ----
    x_f = x.astype(jnp.float32)
    if b_pad != batch:
        x_f = jnp.pad(x_f, ((0, b_pad - batch), (0, 0), (0, 0)))
    w0 = w_first.astype(jnp.float32)                                          # (I, R)
    wmid_flat = w_mid.astype(jnp.float32).reshape(n_mid, bond, feat * bond)   # (n_mid, R, I*R)
    wlast_t = jnp.transpose(w_last).astype(jnp.float32)                       # (I, R)

    out = pl.pallas_call(
        _linear_region_kernel,
        out_shape=jax.ShapeDtypeStruct((b_pad, 1), jnp.float32),
        grid=(nbt,),
        in_specs=[
            # per-batch-tile input slab, native layout; trailing dims = full dims
            pl.BlockSpec((tb, n_sites, feat), lambda b: (b, 0, 0)),
            # resident weights (constant block index -> loaded once)
            pl.BlockSpec((feat, bond), lambda b: (0, 0)),
            pl.BlockSpec((n_mid, bond, feat * bond), lambda b: (0, 0, 0)),
            pl.BlockSpec((feat, bond), lambda b: (0, 0)),
        ],
        out_specs=pl.BlockSpec((tb, 1), lambda b: (b, 0)),
        compiler_params=pltpu.CompilerParams(
            dimension_semantics=("parallel",),
        ),
    )(x_f, w0, wmid_flat, wlast_t)

    return out[:batch]                                    # (B, 1) float32


def linear_region_reference(x, w_first, w_mid, w_last):
    """Pure-JAX reference mirroring the torch einsum/bmm chain (high precision)."""
    hp = jax.lax.Precision.HIGHEST
    x = x.astype(jnp.float32)
    n_sites = x.shape[1]
    v = jnp.einsum('ir,bi->br', w_first, x[:, 0, :], precision=hp)
    for k in range(w_mid.shape[0]):
        mats = jnp.einsum('lir,bi->blr', w_mid[k], x[:, k + 1, :], precision=hp)
        v = jnp.einsum('bl,blr->br', v, mats, precision=hp)
    u = jnp.einsum('li,bi->bl', w_last, x[:, n_sites - 1, :], precision=hp)
    return jnp.sum(v * u, axis=-1, keepdims=True)


if __name__ == "__main__":
    B, N, I, R = 2, 8, 4, 16   # batch, sites, feature dim, bond dim

    key = jax.random.PRNGKey(0)
    kx, k0, km, kl = jax.random.split(key, 4)
    scale = 1.0 / jnp.sqrt(jnp.float32(I * R))
    x = jax.random.normal(kx, (B, N, I), jnp.float32)
    # deterministic synthetic parameters matching the torch module's .tensor shapes
    w_first = scale * jax.random.normal(k0, (I, R), jnp.float32)          # (feat, bond)
    w_mid = scale * jax.random.normal(km, (N - 2, R, I, R), jnp.float32)  # (bond, feat, bond)
    w_last = scale * jax.random.normal(kl, (R, I), jnp.float32)           # (bond, feat)

    out = jax.block_until_ready(linear_region_forward(x, w_first, w_mid, w_last))
    ref = linear_region_reference(x, w_first, w_mid, w_last)
    assert out.shape == (B, 1) and out.dtype == jnp.float32
    assert jnp.allclose(out, ref, rtol=1e-3, atol=1e-3), (out, ref)

    # multi-tile + padded path (still small): exercises nbt >= 2 and zero-pad rows
    B2 = 300
    x2 = jax.random.normal(jax.random.PRNGKey(1), (B2, N, I), jnp.float32)
    out2 = jax.block_until_ready(linear_region_forward(x2, w_first, w_mid, w_last))
    ref2 = linear_region_reference(x2, w_first, w_mid, w_last)
    assert out2.shape == (B2, 1)
    assert jnp.allclose(out2, ref2, rtol=1e-3, atol=1e-3)

    print("KERNEL_OK")
</pallas_src>

<mosaic_0001>
module attributes {stable_mosaic.version = 11 : i64} {
  func.func @_linear_region_kernel(%arg0: i32, %arg1: memref<2x8x4xf32, #tpu.memory_space<vmem>>, %arg2: memref<4x16xf32, #tpu.memory_space<vmem>>, %arg3: memref<6x16x64xf32, #tpu.memory_space<vmem>>, %arg4: memref<4x16xf32, #tpu.memory_space<vmem>>, %arg5: memref<2x1xf32, #tpu.memory_space<vmem>>) attributes {dimension_semantics = [#tpu.dimension_semantics<parallel>], iteration_bounds = array<i64: 1>, scalar_prefetch = 0 : i64, scratch_operands = 0 : i64, tpu.core_type = #tpu.core_type<tc>, window_params = [{transform_indices = @transform_0, window_bounds = array<i64: 2, 8, 4>}, {pipeline_mode = #tpu.pipeline_mode<synchronous>, transform_indices = @transform_1, window_bounds = array<i64: 4, 16>}, {pipeline_mode = #tpu.pipeline_mode<synchronous>, transform_indices = @transform_2, window_bounds = array<i64: 6, 16, 64>}, {pipeline_mode = #tpu.pipeline_mode<synchronous>, transform_indices = @transform_3, window_bounds = array<i64: 4, 16>}, {transform_indices = @transform_4, window_bounds = array<i64: 2, 1>}]} {
    %c0 = arith.constant 0 : index
    %c0_0 = arith.constant 0 : index
    %c0_1 = arith.constant 0 : index
    %0 = vector.load %arg1[%c0, %c0_0, %c0_1] : memref<2x8x4xf32, #tpu.memory_space<vmem>>, vector<2x1x4xf32>
    %1 = vector.shape_cast %0 : vector<2x1x4xf32> to vector<2x4xf32>
    %c0_2 = arith.constant 0 : index
    %c0_3 = arith.constant 0 : index
    %2 = vector.load %arg2[%c0_2, %c0_3] : memref<4x16xf32, #tpu.memory_space<vmem>>, vector<4x16xf32>
    %cst = arith.constant dense<0.000000e+00> : vector<2x16xf32>
    %3 = tpu.matmul %1, %2, %cst {dimension_numbers = #tpu.dot_dimension_numbers<[1], [0], [0], [1], [0, 0, 1, 1], [], []>} : vector<2x4xf32>, vector<4x16xf32>, vector<2x16xf32> -> vector<2x16xf32>
    %c0_4 = arith.constant 0 : index
    %c1 = arith.constant 1 : index
    %c0_5 = arith.constant 0 : index
    %4 = vector.load %arg1[%c0_4, %c1, %c0_5] : memref<2x8x4xf32, #tpu.memory_space<vmem>>, vector<2x1x4xf32>
    %5 = vector.shape_cast %4 : vector<2x1x4xf32> to vector<2x4xf32>
    %c0_6 = arith.constant 0 : index
    %c0_7 = arith.constant 0 : index
    %c0_8 = arith.constant 0 : index
    %6 = vector.load %arg3[%c0_6, %c0_7, %c0_8] : memref<6x16x64xf32, #tpu.memory_space<vmem>>, vector<1x16x64xf32>
    %7 = vector.shape_cast %6 : vector<1x16x64xf32> to vector<16x64xf32>
    %cst_9 = arith.constant dense<0.000000e+00> : vector<2x64xf32>
    %8 = tpu.matmul %3, %7, %cst_9 {dimension_numbers = #tpu.dot_dimension_numbers<[1], [0], [0], [1], [0, 0, 1, 1], [], []>} : vector<2x16xf32>, vector<16x64xf32>, vector<2x64xf32> -> vector<2x64xf32>
    %9 = vector.extract_strided_slice %5 {offsets = [0, 0], sizes = [2, 1], strides = [1, 1]} : vector<2x4xf32> to vector<2x1xf32>
    %10 = vector.extract_strided_slice %8 {offsets = [0, 0], sizes = [2, 16], strides = [1, 1]} : vector<2x64xf32> to vector<2x16xf32>
    %11 = vector.broadcast %9 : vector<2x1xf32> to vector<2x16xf32>
    %12 = arith.mulf %11, %10 : vector<2x16xf32>
    %13 = vector.extract_strided_slice %5 {offsets = [0, 1], sizes = [2, 1], strides = [1, 1]} : vector<2x4xf32> to vector<2x1xf32>
    %14 = vector.extract_strided_slice %8 {offsets = [0, 16], sizes = [2, 16], strides = [1, 1]} : vector<2x64xf32> to vector<2x16xf32>
    %15 = vector.broadcast %13 : vector<2x1xf32> to vector<2x16xf32>
    %16 = arith.mulf %15, %14 : vector<2x16xf32>
    %17 = arith.addf %12, %16 : vector<2x16xf32>
    %18 = vector.extract_strided_slice %5 {offsets = [0, 2], sizes = [2, 1], strides = [1, 1]} : vector<2x4xf32> to vector<2x1xf32>
    %19 = vector.extract_strided_slice %8 {offsets = [0, 32], sizes = [2, 16], strides = [1, 1]} : vector<2x64xf32> to vector<2x16xf32>
    %20 = vector.broadcast %18 : vector<2x1xf32> to vector<2x16xf32>
    %21 = arith.mulf %20, %19 : vector<2x16xf32>
    %22 = arith.addf %17, %21 : vector<2x16xf32>
    %23 = vector.extract_strided_slice %5 {offsets = [0, 3], sizes = [2, 1], strides = [1, 1]} : vector<2x4xf32> to vector<2x1xf32>
    %24 = vector.extract_strided_slice %8 {offsets = [0, 48], sizes = [2, 16], strides = [1, 1]} : vector<2x64xf32> to vector<2x16xf32>
    %25 = vector.broadcast %23 : vector<2x1xf32> to vector<2x16xf32>
    %26 = arith.mulf %25, %24 : vector<2x16xf32>
    %27 = arith.addf %22, %26 : vector<2x16xf32>
    %c0_10 = arith.constant 0 : index
    %c2 = arith.constant 2 : index
    %c0_11 = arith.constant 0 : index
    %28 = vector.load %arg1[%c0_10, %c2, %c0_11] : memref<2x8x4xf32, #tpu.memory_space<vmem>>, vector<2x1x4xf32>
    %29 = vector.shape_cast %28 : vector<2x1x4xf32> to vector<2x4xf32>
    %c1_12 = arith.constant 1 : index
    %c0_13 = arith.constant 0 : index
    %c0_14 = arith.constant 0 : index
    %30 = vector.load %arg3[%c1_12, %c0_13, %c0_14] : memref<6x16x64xf32, #tpu.memory_space<vmem>>, vector<1x16x64xf32>
    %31 = vector.shape_cast %30 : vector<1x16x64xf32> to vector<16x64xf32>
    %cst_15 = arith.constant dense<0.000000e+00> : vector<2x64xf32>
    %32 = tpu.matmul %27, %31, %cst_15 {dimension_numbers = #tpu.dot_dimension_numbers<[1], [0], [0], [1], [0, 0, 1, 1], [], []>} : vector<2x16xf32>, vector<16x64xf32>, vector<2x64xf32> -> vector<2x64xf32>
    %33 = vector.extract_strided_slice %29 {offsets = [0, 0], sizes = [2, 1], strides = [1, 1]} : vector<2x4xf32> to vector<2x1xf32>
    %34 = vector.extract_strided_slice %32 {offsets = [0, 0], sizes = [2, 16], strides = [1, 1]} : vector<2x64xf32> to vector<2x16xf32>
    %35 = vector.broadcast %33 : vector<2x1xf32> to vector<2x16xf32>
    %36 = arith.mulf %35, %34 : vector<2x16xf32>
    %37 = vector.extract_strided_slice %29 {offsets = [0, 1], sizes = [2, 1], strides = [1, 1]} : vector<2x4xf32> to vector<2x1xf32>
    %38 = vector.extract_strided_slice %32 {offsets = [0, 16], sizes = [2, 16], strides = [1, 1]} : vector<2x64xf32> to vector<2x16xf32>
    %39 = vector.broadcast %37 : vector<2x1xf32> to vector<2x16xf32>
    %40 = arith.mulf %39, %38 : vector<2x16xf32>
    %41 = arith.addf %36, %40 : vector<2x16xf32>
    %42 = vector.extract_strided_slice %29 {offsets = [0, 2], sizes = [2, 1], strides = [1, 1]} : vector<2x4xf32> to vector<2x1xf32>
    %43 = vector.extract_strided_slice %32 {offsets = [0, 32], sizes = [2, 16], strides = [1, 1]} : vector<2x64xf32> to vector<2x16xf32>
    %44 = vector.broadcast %42 : vector<2x1xf32> to vector<2x16xf32>
    %45 = arith.mulf %44, %43 : vector<2x16xf32>
    %46 = arith.addf %41, %45 : vector<2x16xf32>
    %47 = vector.extract_strided_slice %29 {offsets = [0, 3], sizes = [2, 1], strides = [1, 1]} : vector<2x4xf32> to vector<2x1xf32>
    %48 = vector.extract_strided_slice %32 {offsets = [0, 48], sizes = [2, 16], strides = [1, 1]} : vector<2x64xf32> to vector<2x16xf32>
    %49 = vector.broadcast %47 : vector<2x1xf32> to vector<2x16xf32>
    %50 = arith.mulf %49, %48 : vector<2x16xf32>
    %51 = arith.addf %46, %50 : vector<2x16xf32>
    %c0_16 = arith.constant 0 : index
    %c3 = arith.constant 3 : index
    %c0_17 = arith.constant 0 : index
    %52 = vector.load %arg1[%c0_16, %c3, %c0_17] : memref<2x8x4xf32, #tpu.memory_space<vmem>>, vector<2x1x4xf32>
    %53 = vector.shape_cast %52 : vector<2x1x4xf32> to vector<2x4xf32>
    %c2_18 = arith.constant 2 : index
    %c0_19 = arith.constant 0 : index
    %c0_20 = arith.constant 0 : index
    %54 = vector.load %arg3[%c2_18, %c0_19, %c0_20] : memref<6x16x64xf32, #tpu.memory_space<vmem>>, vector<1x16x64xf32>
    %55 = vector.shape_cast %54 : vector<1x16x64xf32> to vector<16x64xf32>
    %cst_21 = arith.constant dense<0.000000e+00> : vector<2x64xf32>
    %56 = tpu.matmul %51, %55, %cst_21 {dimension_numbers = #tpu.dot_dimension_numbers<[1], [0], [0], [1], [0, 0, 1, 1], [], []>} : vector<2x16xf32>, vector<16x64xf32>, vector<2x64xf32> -> vector<2x64xf32>
    %57 = vector.extract_strided_slice %53 {offsets = [0, 0], sizes = [2, 1], strides = [1, 1]} : vector<2x4xf32> to vector<2x1xf32>
    %58 = vector.extract_strided_slice %56 {offsets = [0, 0], sizes = [2, 16], strides = [1, 1]} : vector<2x64xf32> to vector<2x16xf32>
    %59 = vector.broadcast %57 : vector<2x1xf32> to vector<2x16xf32>
    %60 = arith.mulf %59, %58 : vector<2x16xf32>
    %61 = vector.extract_strided_slice %53 {offsets = [0, 1], sizes = [2, 1], strides = [1, 1]} : vector<2x4xf32> to vector<2x1xf32>
    %62 = vector.extract_strided_slice %56 {offsets = [0, 16], sizes = [2, 16], strides = [1, 1]} : vector<2x64xf32> to vector<2x16xf32>
    %63 = vector.broadcast %61 : vector<2x1xf32> to vector<2x16xf32>
    %64 = arith.mulf %63, %62 : vector<2x16xf32>
    %65 = arith.addf %60, %64 : vector<2x16xf32>
    %66 = vector.extract_strided_slice %53 {offsets = [0, 2], sizes = [2, 1], strides = [1, 1]} : vector<2x4xf32> to vector<2x1xf32>
    %67 = vector.extract_strided_slice %56 {offsets = [0, 32], sizes = [2, 16], strides = [1, 1]} : vector<2x64xf32> to vector<2x16xf32>
    %68 = vector.broadcast %66 : vector<2x1xf32> to vector<2x16xf32>
    %69 = arith.mulf %68, %67 : vector<2x16xf32>
    %70 = arith.addf %65, %69 : vector<2x16xf32>
    %71 = vector.extract_strided_slice %53 {offsets = [0, 3], sizes = [2, 1], strides = [1, 1]} : vector<2x4xf32> to vector<2x1xf32>
    %72 = vector.extract_strided_slice %56 {offsets = [0, 48], sizes = [2, 16], strides = [1, 1]} : vector<2x64xf32> to vector<2x16xf32>
    %73 = vector.broadcast %71 : vector<2x1xf32> to vector<2x16xf32>
    %74 = arith.mulf %73, %72 : vector<2x16xf32>
    %75 = arith.addf %70, %74 : vector<2x16xf32>
    %c0_22 = arith.constant 0 : index
    %c4 = arith.constant 4 : index
    %c0_23 = arith.constant 0 : index
    %76 = vector.load %arg1[%c0_22, %c4, %c0_23] : memref<2x8x4xf32, #tpu.memory_space<vmem>>, vector<2x1x4xf32>
    %77 = vector.shape_cast %76 : vector<2x1x4xf32> to vector<2x4xf32>
    %c3_24 = arith.constant 3 : index
    %c0_25 = arith.constant 0 : index
    %c0_26 = arith.constant 0 : index
    %78 = vector.load %arg3[%c3_24, %c0_25, %c0_26] : memref<6x16x64xf32, #tpu.memory_space<vmem>>, vector<1x16x64xf32>
    %79 = vector.shape_cast %78 : vector<1x16x64xf32> to vector<16x64xf32>
    %cst_27 = arith.constant dense<0.000000e+00> : vector<2x64xf32>
    %80 = tpu.matmul %75, %79, %cst_27 {dimension_numbers = #tpu.dot_dimension_numbers<[1], [0], [0], [1], [0, 0, 1, 1], [], []>} : vector<2x16xf32>, vector<16x64xf32>, vector<2x64xf32> -> vector<2x64xf32>
    %81 = vector.extract_strided_slice %77 {offsets = [0, 0], sizes = [2, 1], strides = [1, 1]} : vector<2x4xf32> to vector<2x1xf32>
    %82 = vector.extract_strided_slice %80 {offsets = [0, 0], sizes = [2, 16], strides = [1, 1]} : vector<2x64xf32> to vector<2x16xf32>
    %83 = vector.broadcast %81 : vector<2x1xf32> to vector<2x16xf32>
    %84 = arith.mulf %83, %82 : vector<2x16xf32>
    %85 = vector.extract_strided_slice %77 {offsets = [0, 1], sizes = [2, 1], strides = [1, 1]} : vector<2x4xf32> to vector<2x1xf32>
    %86 = vector.extract_strided_slice %80 {offsets = [0, 16], sizes = [2, 16], strides = [1, 1]} : vector<2x64xf32> to vector<2x16xf32>
    %87 = vector.broadcast %85 : vector<2x1xf32> to vector<2x16xf32>
    %88 = arith.mulf %87, %86 : vector<2x16xf32>
    %89 = arith.addf %84, %88 : vector<2x16xf32>
    %90 = vector.extract_strided_slice %77 {offsets = [0, 2], sizes = [2, 1], strides = [1, 1]} : vector<2x4xf32> to vector<2x1xf32>
    %91 = vector.extract_strided_slice %80 {offsets = [0, 32], sizes = [2, 16], strides = [1, 1]} : vector<2x64xf32> to vector<2x16xf32>
    %92 = vector.broadcast %90 : vector<2x1xf32> to vector<2x16xf32>
    %93 = arith.mulf %92, %91 : vector<2x16xf32>
    %94 = arith.addf %89, %93 : vector<2x16xf32>
    %95 = vector.extract_strided_slice %77 {offsets = [0, 3], sizes = [2, 1], strides = [1, 1]} : vector<2x4xf32> to vector<2x1xf32>
    %96 = vector.extract_strided_slice %80 {offsets = [0, 48], sizes = [2, 16], strides = [1, 1]} : vector<2x64xf32> to vector<2x16xf32>
    %97 = vector.broadcast %95 : vector<2x1xf32> to vector<2x16xf32>
    %98 = arith.mulf %97, %96 : vector<2x16xf32>
    %99 = arith.addf %94, %98 : vector<2x16xf32>
    %c0_28 = arith.constant 0 : index
    %c5 = arith.constant 5 : index
    %c0_29 = arith.constant 0 : index
    %100 = vector.load %arg1[%c0_28, %c5, %c0_29] : memref<2x8x4xf32, #tpu.memory_space<vmem>>, vector<2x1x4xf32>
    %101 = vector.shape_cast %100 : vector<2x1x4xf32> to vector<2x4xf32>
    %c4_30 = arith.constant 4 : index
    %c0_31 = arith.constant 0 : index
    %c0_32 = arith.constant 0 : index
    %102 = vector.load %arg3[%c4_30, %c0_31, %c0_32] : memref<6x16x64xf32, #tpu.memory_space<vmem>>, vector<1x16x64xf32>
    %103 = vector.shape_cast %102 : vector<1x16x64xf32> to vector<16x64xf32>
    %cst_33 = arith.constant dense<0.000000e+00> : vector<2x64xf32>
    %104 = tpu.matmul %99, %103, %cst_33 {dimension_numbers = #tpu.dot_dimension_numbers<[1], [0], [0], [1], [0, 0, 1, 1], [], []>} : vector<2x16xf32>, vector<16x64xf32>, vector<2x64xf32> -> vector<2x64xf32>
    %105 = vector.extract_strided_slice %101 {offsets = [0, 0], sizes = [2, 1], strides = [1, 1]} : vector<2x4xf32> to vector<2x1xf32>
    %106 = vector.extract_strided_slice %104 {offsets = [0, 0], sizes = [2, 16], strides = [1, 1]} : vector<2x64xf32> to vector<2x16xf32>
    %107 = vector.broadcast %105 : vector<2x1xf32> to vector<2x16xf32>
    %108 = arith.mulf %107, %106 : vector<2x16xf32>
    %109 = vector.extract_strided_slice %101 {offsets = [0, 1], sizes = [2, 1], strides = [1, 1]} : vector<2x4xf32> to vector<2x1xf32>
    %110 = vector.extract_strided_slice %104 {offsets = [0, 16], sizes = [2, 16], strides = [1, 1]} : vector<2x64xf32> to vector<2x16xf32>
    %111 = vector.broadcast %109 : vector<2x1xf32> to vector<2x16xf32>
    %112 = arith.mulf %111, %110 : vector<2x16xf32>
    %113 = arith.addf %108, %112 : vector<2x16xf32>
    %114 = vector.extract_strided_slice %101 {offsets = [0, 2], sizes = [2, 1], strides = [1, 1]} : vector<2x4xf32> to vector<2x1xf32>
    %115 = vector.extract_strided_slice %104 {offsets = [0, 32], sizes = [2, 16], strides = [1, 1]} : vector<2x64xf32> to vector<2x16xf32>
    %116 = vector.broadcast %114 : vector<2x1xf32> to vector<2x16xf32>
    %117 = arith.mulf %116, %115 : vector<2x16xf32>
    %118 = arith.addf %113, %117 : vector<2x16xf32>
    %119 = vector.extract_strided_slice %101 {offsets = [0, 3], sizes = [2, 1], strides = [1, 1]} : vector<2x4xf32> to vector<2x1xf32>
    %120 = vector.extract_strided_slice %104 {offsets = [0, 48], sizes = [2, 16], strides = [1, 1]} : vector<2x64xf32> to vector<2x16xf32>
    %121 = vector.broadcast %119 : vector<2x1xf32> to vector<2x16xf32>
    %122 = arith.mulf %121, %120 : vector<2x16xf32>
    %123 = arith.addf %118, %122 : vector<2x16xf32>
    %c0_34 = arith.constant 0 : index
    %c6 = arith.constant 6 : index
    %c0_35 = arith.constant 0 : index
    %124 = vector.load %arg1[%c0_34, %c6, %c0_35] : memref<2x8x4xf32, #tpu.memory_space<vmem>>, vector<2x1x4xf32>
    %125 = vector.shape_cast %124 : vector<2x1x4xf32> to vector<2x4xf32>
    %c5_36 = arith.constant 5 : index
    %c0_37 = arith.constant 0 : index
    %c0_38 = arith.constant 0 : index
    %126 = vector.load %arg3[%c5_36, %c0_37, %c0_38] : memref<6x16x64xf32, #tpu.memory_space<vmem>>, vector<1x16x64xf32>
    %127 = vector.shape_cast %126 : vector<1x16x64xf32> to vector<16x64xf32>
    %cst_39 = arith.constant dense<0.000000e+00> : vector<2x64xf32>
    %128 = tpu.matmul %123, %127, %cst_39 {dimension_numbers = #tpu.dot_dimension_numbers<[1], [0], [0], [1], [0, 0, 1, 1], [], []>} : vector<2x16xf32>, vector<16x64xf32>, vector<2x64xf32> -> vector<2x64xf32>
    %129 = vector.extract_strided_slice %125 {offsets = [0, 0], sizes = [2, 1], strides = [1, 1]} : vector<2x4xf32> to vector<2x1xf32>
    %130 = vector.extract_strided_slice %128 {offsets = [0, 0], sizes = [2, 16], strides = [1, 1]} : vector<2x64xf32> to vector<2x16xf32>
    %131 = vector.broadcast %129 : vector<2x1xf32> to vector<2x16xf32>
    %132 = arith.mulf %131, %130 : vector<2x16xf32>
    %133 = vector.extract_strided_slice %125 {offsets = [0, 1], sizes = [2, 1], strides = [1, 1]} : vector<2x4xf32> to vector<2x1xf32>
    %134 = vector.extract_strided_slice %128 {offsets = [0, 16], sizes = [2, 16], strides = [1, 1]} : vector<2x64xf32> to vector<2x16xf32>
    %135 = vector.broadcast %133 : vector<2x1xf32> to vector<2x16xf32>
    %136 = arith.mulf %135, %134 : vector<2x16xf32>
    %137 = arith.addf %132, %136 : vector<2x16xf32>
    %138 = vector.extract_strided_slice %125 {offsets = [0, 2], sizes = [2, 1], strides = [1, 1]} : vector<2x4xf32> to vector<2x1xf32>
    %139 = vector.extract_strided_slice %128 {offsets = [0, 32], sizes = [2, 16], strides = [1, 1]} : vector<2x64xf32> to vector<2x16xf32>
    %140 = vector.broadcast %138 : vector<2x1xf32> to vector<2x16xf32>
    %141 = arith.mulf %140, %139 : vector<2x16xf32>
    %142 = arith.addf %137, %141 : vector<2x16xf32>
    %143 = vector.extract_strided_slice %125 {offsets = [0, 3], sizes = [2, 1], strides = [1, 1]} : vector<2x4xf32> to vector<2x1xf32>
    %144 = vector.extract_strided_slice %128 {offsets = [0, 48], sizes = [2, 16], strides = [1, 1]} : vector<2x64xf32> to vector<2x16xf32>
    %145 = vector.broadcast %143 : vector<2x1xf32> to vector<2x16xf32>
    %146 = arith.mulf %145, %144 : vector<2x16xf32>
    %147 = arith.addf %142, %146 : vector<2x16xf32>
    %c0_40 = arith.constant 0 : index
    %c7 = arith.constant 7 : index
    %c0_41 = arith.constant 0 : index
    %148 = vector.load %arg1[%c0_40, %c7, %c0_41] : memref<2x8x4xf32, #tpu.memory_space<vmem>>, vector<2x1x4xf32>
    %149 = vector.shape_cast %148 : vector<2x1x4xf32> to vector<2x4xf32>
    %c0_42 = arith.constant 0 : index
    %c0_43 = arith.constant 0 : index
    %150 = vector.load %arg4[%c0_42, %c0_43] : memref<4x16xf32, #tpu.memory_space<vmem>>, vector<4x16xf32>
    %cst_44 = arith.constant dense<0.000000e+00> : vector<2x16xf32>
    %151 = tpu.matmul %149, %150, %cst_44 {dimension_numbers = #tpu.dot_dimension_numbers<[1], [0], [0], [1], [0, 0, 1, 1], [], []>} : vector<2x4xf32>, vector<4x16xf32>, vector<2x16xf32> -> vector<2x16xf32>
    %cst_45 = arith.constant 1.000000e+00 : f32
    %152 = vector.broadcast %cst_45 : f32 to vector<16x1xf32>
    %153 = arith.mulf %147, %151 : vector<2x16xf32>
    %cst_46 = arith.constant dense<0.000000e+00> : vector<2x1xf32>
    %154 = tpu.matmul %153, %152, %cst_46 {dimension_numbers = #tpu.dot_dimension_numbers<[1], [0], [0], [1], [0, 0, 1, 1], [], []>} : vector<2x16xf32>, vector<16x1xf32>, vector<2x1xf32> -> vector<2x1xf32>
    %c0_47 = arith.constant 0 : index
    %c0_48 = arith.constant 0 : index
    %155 = vector.load %arg5[%c0_47, %c0_48] : memref<2x1xf32, #tpu.memory_space<vmem>>, vector<2x1xf32>
    tpu.vector_store %arg5[%c0_47, %c0_48], %154 {strides = array<i32>} : memref<2x1xf32, #tpu.memory_space<vmem>>, vector<2x1xf32>,
    return
  }
  func.func @transform_0(%arg0: i32) -> (i32, i32, i32) {
    %c0_i32 = arith.constant 0 : i32
    %c0_i32_0 = arith.constant 0 : i32
    %c0_i32_1 = arith.constant 0 : i32
    return %arg0, %c0_i32, %c0_i32_0 : i32, i32, i32
  }
  func.func @transform_1(%arg0: i32) -> (i32, i32) {
    %c0_i32 = arith.constant 0 : i32
    %c0_i32_0 = arith.constant 0 : i32
    %c0_i32_1 = arith.constant 0 : i32
    return %c0_i32, %c0_i32_0 : i32, i32
  }
  func.func @transform_2(%arg0: i32) -> (i32, i32, i32) {
    %c0_i32 = arith.constant 0 : i32
    %c0_i32_0 = arith.constant 0 : i32
    %c0_i32_1 = arith.constant 0 : i32
    %c0_i32_2 = arith.constant 0 : i32
    return %c0_i32, %c0_i32_0, %c0_i32_1 : i32, i32, i32
  }
  func.func @transform_3(%arg0: i32) -> (i32, i32) {
    %c0_i32 = arith.constant 0 : i32
    %c0_i32_0 = arith.constant 0 : i32
    %c0_i32_1 = arith.constant 0 : i32
    return %c0_i32, %c0_i32_0 : i32, i32
  }
  func.func @transform_4(%arg0: i32) -> (i32, i32) {
    %c0_i32 = arith.constant 0 : i32
    %c0_i32_0 = arith.constant 0 : i32
    return %arg0, %c0_i32 : i32, i32
  }
}

</mosaic_0001>

<bundles_post_ra>
// kernel: tpu_custom_call.1
= control target key start
LH: loop header
LB: loop body
LE: loop exit
PB: predicated region body
PF: predicated region fallthrough
CT: control target
= control target key end

     0   :  { %9 = vsyncpa [#allocation3], 0  ;;  %s827_s18 = smov [#allocation2]   ;;  %s828_s20 = smov 128   ;;  %s1015_s0 = inlined_call_operand.vmem [shape: f32[2,8,4], index: 0, kind: input, shape index: {}]   ;;  %s1016_s1 = inlined_call_operand.vmem [shape: f32[4,16], index: 1, kind: input, shape index: {}]   ;;  %s1017_s2 = inlined_call_operand.hbm [shape: f32[6,16,64], index: 2, kind: input, shape index: {}]   ;;  %s1018_s3 = inlined_call_operand.vmem [shape: f32[4,16], index: 3, kind: input, shape index: {}]   ;;  %s1019_s4 = inlined_call_operand.vmem [shape: f32[2,1], index: 4, kind: output, shape index: {}]  }
   0x1   :  { %s18_s17 = sshll.u32 %s1017_s2, 4  ;;  %s20_s19 = sshll.u32 %s827_s18, 4  ;;  %s19_s17 = int_to_ptr.hbm [resolvable:$true] %s18_s17  ;;  %s21_s19 = int_to_ptr.vmem [resolvable:$true] %s20_s19 }
   0x2   :  { %s829_s21 = smov 8  }
   0x3   :  { %26 = dma.hbm_to_vmem [thread:$0]  %s19_s17, 1536, %s21_s19, [#allocation3], %s828_s20, %s828_s20, %s829_s21  }
   0x4   :  { %825 = dma.done.wait [#allocation3], 1536  }
   0x5   :  { %826 = vsyncadd [#allocation3], 4294965760  ;;  %vm44_vm0 = vcmask 1043456   ;;  %vm39_vm1 = vcmask 1041409   ;;  %v35_v0 = vld [vmem:[%s1016_s1] sm:$0xf] }
   0x6   :  { %v33_v1 = vld [vmem:[%s1015_s0] sm:$0x1]  ;;  %v34_v2 = vld [vmem:[%s1015_s0 + $0x8] sm:$0x1]  ;;  %742 = vmatpush.msk.msra.mxu0 %vm44_vm0, %v35_v0  ;;  %vm41_vm2 = vcmask 31744   ;;  %v830_v9 = vmov 0  }
   0x7   :  { %v38_v3 = vrot.slane %v34_v2, 7  ;;  %v71_v4 = vld [vmem:[#allocation2 + $0x8] sm:$0xff]  ;;  %v70_v6 = vld [vmem:[#allocation2] sm:$0xff]  ;;  %766 = vset.pattern.permute.xlu1 %v830_v9  ;;  %764 = vset.pattern.permute.xlu0 %v830_v9  ;;  %v831_v10 = vmov 1   ;;  %v832_v11 = vmov 2   ;;  %v833_v12 = vmov 3  }
   0x8   :  { %90 = vmatpush.msra.mxu1 %v71_v4  ;;  %v68_v7 = vld [vmem:[%s1015_s0 + $0x1] sm:$0x1]  ;;  %v69_v8 = vld [vmem:[%s1015_s0 + $0x9] sm:$0x1]  ;;  %767 = vset.pattern.permute.xlu2 %v831_v10  ;;  %vm72_vm3 = vcmask 130048   ;;  %s834_s30 = smov 80  }
   0x9   :  { %v40_v5 = vsel %vm39_vm1, %v38_v3, %v33_v1  ;;  %98 = vperm.xlu1 %766, %v68_v7   ;;  %103 = vperm.xlu0 %764, %v69_v8   ;;  %s835_s5 = smov 96   ;;  %s836_s6 = smov 112   ;;  %v166_v15 = vld [vmem:[%s1015_s0 + $0x2] sm:$0x1]  ;;  %v170_v20 = vld [vmem:[#allocation2 + $0x18] sm:$0xff]  ;;  %v169_v21 = vld [vmem:[#allocation2 + $0x10] sm:$0xff] }
   0xa   :  { %743 = vmatmul.msk.f32.vlgmr.msra.gmra.mxu0 %vm41_vm2, %v40_v5  ;;  %91 = vmatpush.msra.mxu1 %v70_v6  ;;  %v167_v24 = vld [vmem:[%s1015_s0 + $0xa] sm:$0x1]  ;;  %v270_v57 = vld [vmem:[#allocation2 + $0x20] sm:$0xff]  ;;  %v268_v59 = vld [vmem:[%s1015_s0 + $0xb] sm:$0x1]  ;;  %vm735_vm4 = vcmask 1024  }
   0xb   :  { %113 = vperm.xlu2 %767, %v68_v7   ;;  %191 = vmatpush.msra.mxu2 %v170_v20  ;;  %v271_v56 = vld [vmem:[#allocation2 + $0x28] sm:$0xff]  ;;  %v267_v60 = vld [vmem:[%s1015_s0 + $0x3] sm:$0x1] }
   0xc   :  { %292 = vmatpush.msra.mxu3 %v271_v56 }
   0xd   :  { %192 = vmatpush.msra.mxu2 %v169_v21 }
   0xe   :  { %293 = vmatpush.msra.mxu3 %v270_v57 }
  0x11   :  { %765 = vset.pattern.permute.xlu0 %v831_v10  ;;  %768 = vset.pattern.permute.xlu1 %v832_v11 }
  0x12   :  { %117 = vperm.xlu0 %765, %v69_v8   ;;  %135 = vperm.xlu1 %768, %v69_v8  }
  0x13   :  { %770 = vset.pattern.permute.xlu2 %v833_v12 }
  0x14   :  { %153 = vperm.xlu2 %770, %v69_v8  }
  0x1a   :  { %769 = vset.pattern.permute.xlu0 %v832_v11  ;;  %771 = vset.pattern.permute.xlu1 %v830_v9 }
  0x1b   :  { %131 = vperm.xlu0 %769, %v68_v7  }
  0x65   :  { %v114_v17 = vpop.permute.xlu2 %113 }
  0x6e   :  { %v154_v22 = vpop.permute.xlu2 %153 }
  0x7b   :  { %v99_v18 = vpop.permute.xlu1 %98  ;;  %v104_v19 = vpop.permute.xlu0 %103 }
  0x84   :  { %v136_v23 = vpop.permute.xlu1 %135  ;;  %v118_v25 = vpop.permute.xlu0 %117 }
  0x87   :  { %v65_v13 = vpop.f32.mrf.mxu0 }
  0x88   :  { %744 = vmatmul.msk.f32.vlgmr.msra.gmra.mxu1 %vm72_vm3, %v65_v13 }
  0x8d   :  { %v132_v28 = vpop.permute.xlu0 %131 }
 0x105   :  { %v93_v14 = vpop.f32.mrf.mxu1 }
 0x106   :  { %156 = vrot.lane.b32.xlu0 %v93_v14, %s834_s30  ;;  %138 = vrot.lane.b32.xlu1 %v93_v14, %s835_s5  ;;  %v107_v16 = vrot.slane %v93_v14, 1  ;;  %v110_v34 = vmul.f32 %v99_v18, %v93_v14 }
 0x107   :  { %120 = vrot.lane.b32.xlu2 %v93_v14, %s836_s6 }
 0x108   :  { %v111_v32 = vmul.f32 %v107_v16, %v104_v19 }
 0x10e   :  { %122 = vrot.lane.b32.xlu1 %v107_v16, %s836_s6  ;;  %232 = vperm.xlu0 %769, %v166_v15  }
 0x10f   :  { %140 = vrot.lane.b32.xlu2 %v107_v16, %s835_s5 }
 0x116   :  { %158 = vrot.lane.b32.xlu1 %v107_v16, %s834_s30  ;;  %776 = vset.pattern.permute.xlu0 %v830_v9 }
 0x117   :  { %149 = vperm.xlu2 %770, %v68_v7  }
 0x11e   :  { %204 = vperm.xlu1 %771, %v167_v24  }
 0x11f   :  { %772 = vset.pattern.permute.xlu2 %v831_v10 }
 0x120   :  { %218 = vperm.xlu2 %772, %v167_v24  }
 0x126   :  { %199 = vperm.xlu1 %771, %v166_v15  }
 0x128   :  { %214 = vperm.xlu2 %772, %v166_v15  }
 0x12e   :  { %773 = vset.pattern.permute.xlu1 %v832_v11 }
 0x12f   :  { %236 = vperm.xlu1 %773, %v167_v24  }
 0x130   :  { %774 = vset.pattern.permute.xlu2 %v833_v12 }
 0x131   :  { %254 = vperm.xlu2 %774, %v167_v24  }
 0x137   :  { %775 = vset.pattern.permute.xlu1 %v833_v12 }
 0x139   :  { %779 = vset.pattern.permute.xlu2 %v831_v10 }
 0x161   :  { %v121_v26 = vpop.permute.xlu2 %120 }
 0x162   :  { %v126_v33 = vmul.f32 %v121_v26, %v114_v17 }
 0x164   :  { %v128_v37 = vadd.f32 %v126_v33, %v110_v34  ;;  %v371_v33 = vld [vmem:[#allocation2 + $0x30] sm:$0xff] }
 0x169   :  { %v141_v31 = vpop.permute.xlu2 %140 }
 0x16a   :  { %v145_v38 = vmul.f32 %v141_v31, %v136_v23 }
 0x171   :  { %v150_v44 = vpop.permute.xlu2 %149 }
 0x178   :  { %v139_v27 = vpop.permute.xlu1 %138  ;;  %v157_v39 = vpop.permute.xlu0 %156 }
 0x179   :  { %v144_v35 = vmul.f32 %v139_v27, %v132_v28  ;;  %v162_v45 = vmul.f32 %v157_v39, %v150_v44  ;;  %v368_v28 = vld [vmem:[%s1015_s0 + $0x4] sm:$0x1] }
 0x17a   :  { %v219_v52 = vpop.permute.xlu2 %218 }
 0x17b   :  { %v146_v41 = vadd.f32 %v144_v35, %v128_v37 }
 0x17d   :  { %v164_v47 = vadd.f32 %v162_v45, %v146_v41 }
 0x180   :  { %v123_v29 = vpop.permute.xlu1 %122  ;;  %v233_v58 = vpop.permute.xlu0 %232 }
 0x181   :  { %v127_v30 = vmul.f32 %v123_v29, %v118_v25 }
 0x182   :  { %v215_v54 = vpop.permute.xlu2 %214 }
 0x183   :  { %v129_v36 = vadd.f32 %v127_v30, %v111_v32  ;;  %v372_v30 = vld [vmem:[#allocation2 + $0x38] sm:$0xff] }
 0x184   :  { %393 = vmatpush.msrb.mxu0 %v372_v30 }
 0x185   :  { %v147_v42 = vadd.f32 %v145_v38, %v129_v36  ;;  %v369_v36 = vld [vmem:[%s1015_s0 + $0xc] sm:$0x1] }
 0x186   :  { %394 = vmatpush.msrb.mxu0 %v371_v33 }
 0x188   :  { %v159_v40 = vpop.permute.xlu1 %158 }
 0x189   :  { %v163_v43 = vmul.f32 %v159_v40, %v154_v22 }
 0x18b   :  { %v165_v46 = vadd.f32 %v163_v43, %v147_v42  ;;  %v255_v61 = vpop.permute.xlu2 %254 }
 0x18d   :  { %v173_v48 = vrot.slane %v165_v46, 7 }
 0x18f   :  { %v174_v49 = vsel %vm39_vm1, %v173_v48, %v164_v47 }
 0x190   :  { %745 = vmatmul.msk.f32.vlgmr.msra.gmra.mxu2 %vm72_vm3, %v174_v49  ;;  %v205_v53 = vpop.permute.xlu1 %204 }
 0x198   :  { %v200_v55 = vpop.permute.xlu1 %199 }
 0x1a1   :  { %v237_v62 = vpop.permute.xlu1 %236 }
 0x213   :  { %v194_v50 = vpop.f32.mrf.mxu2 }
 0x214   :  { %239 = vrot.lane.b32.xlu1 %v194_v50, %s835_s5  ;;  %221 = vrot.lane.b32.xlu0 %v194_v50, %s836_s6  ;;  %v208_v51 = vrot.slane %v194_v50, 1  ;;  %v211_v6 = vmul.f32 %v200_v55, %v194_v50 }
 0x216   :  { %241 = vrot.lane.b32.xlu2 %v208_v51, %s835_s5  ;;  %v212_v5 = vmul.f32 %v208_v51, %v205_v53 }
 0x21c   :  { %250 = vperm.xlu1 %775, %v166_v15   ;;  %223 = vrot.lane.b32.xlu0 %v208_v51, %s836_s6 }
 0x21e   :  { %257 = vrot.lane.b32.xlu2 %v194_v50, %s834_s30 }
 0x224   :  { %259 = vrot.lane.b32.xlu0 %v208_v51, %s834_s30  ;;  %777 = vset.pattern.permute.xlu1 %v831_v10 }
 0x225   :  { %319 = vperm.xlu1 %777, %v268_v59  }
 0x226   :  { %315 = vperm.xlu2 %779, %v267_v60  }
 0x22c   :  { %305 = vperm.xlu0 %776, %v268_v59  }
 0x22d   :  { %778 = vset.pattern.permute.xlu1 %v830_v9 }
 0x22e   :  { %300 = vperm.xlu1 %778, %v267_v60   ;;  %782 = vset.pattern.permute.xlu2 %v833_v12 }
 0x22f   :  { %355 = vperm.xlu2 %782, %v268_v59  }
 0x234   :  { %781 = vset.pattern.permute.xlu0 %v832_v11 }
 0x235   :  { %333 = vperm.xlu0 %781, %v267_v60  }
 0x236   :  { %780 = vset.pattern.permute.xlu1 %v832_v11 }
 0x237   :  { %337 = vperm.xlu1 %780, %v268_v59  }
 0x23f   :  { %783 = vset.pattern.permute.xlu1 %v830_v9 }
 0x270   :  { %v242_v1 = vpop.permute.xlu2 %241 }
 0x271   :  { %v246_v13 = vmul.f32 %v242_v1, %v237_v62 }
 0x278   :  { %v258_v15 = vpop.permute.xlu2 %257 }
 0x280   :  { %v316_v29 = vpop.permute.xlu2 %315 }
 0x286   :  { %v222_v63 = vpop.permute.xlu0 %221  ;;  %v240_v0 = vpop.permute.xlu1 %239 }
 0x287   :  { %v227_v4 = vmul.f32 %v222_v63, %v215_v54  ;;  %v245_v17 = vmul.f32 %v240_v0, %v233_v58 }
 0x289   :  { %v229_v14 = vadd.f32 %v227_v4, %v211_v6  ;;  %v356_v32 = vpop.permute.xlu2 %355 }
 0x28b   :  { %v247_v21 = vadd.f32 %v245_v17, %v229_v14 }
 0x28e   :  { %v224_v2 = vpop.permute.xlu0 %223  ;;  %v251_v8 = vpop.permute.xlu1 %250 }
 0x28f   :  { %v228_v3 = vmul.f32 %v224_v2, %v219_v52  ;;  %v263_v18 = vmul.f32 %v258_v15, %v251_v8  ;;  %v473_v2 = vld [vmem:[#allocation2 + $0x48] sm:$0xff]  ;;  %v469_v8 = vld [vmem:[%s1015_s0 + $0x5] sm:$0x1] }
 0x290   :  { %494 = vmatpush.msrb.mxu1 %v473_v2 }
 0x291   :  { %v230_v7 = vadd.f32 %v228_v3, %v212_v5  ;;  %v265_v23 = vadd.f32 %v263_v18, %v247_v21  ;;  %v472_v5 = vld [vmem:[#allocation2 + $0x40] sm:$0xff] }
 0x292   :  { %495 = vmatpush.msrb.mxu1 %v472_v5 }
 0x293   :  { %v248_v19 = vadd.f32 %v246_v13, %v230_v7  ;;  %v470_v7 = vld [vmem:[%s1015_s0 + $0xd] sm:$0x1] }
 0x296   :  { %v260_v16 = vpop.permute.xlu0 %259 }
 0x297   :  { %v264_v20 = vmul.f32 %v260_v16, %v255_v61  ;;  %v320_v31 = vpop.permute.xlu1 %319 }
 0x299   :  { %v266_v22 = vadd.f32 %v264_v20, %v248_v19 }
 0x29b   :  { %v274_v24 = vrot.slane %v266_v22, 7 }
 0x29d   :  { %v275_v25 = vsel %vm39_vm1, %v274_v24, %v265_v23 }
 0x29e   :  { %746 = vmatmul.msk.f32.vlgmr.msra.gmra.mxu3 %vm72_vm3, %v275_v25  ;;  %v306_v34 = vpop.permute.xlu0 %305 }
 0x2a0   :  { %v301_v35 = vpop.permute.xlu1 %300 }
 0x2a7   :  { %v334_v38 = vpop.permute.xlu0 %333 }
 0x2a9   :  { %v338_v39 = vpop.permute.xlu1 %337 }
 0x321   :  { %v295_v26 = vpop.f32.mrf.mxu3 }
 0x322   :  { %340 = vrot.lane.b32.xlu1 %v295_v26, %s835_s5  ;;  %322 = vrot.lane.b32.xlu0 %v295_v26, %s836_s6  ;;  %v309_v27 = vrot.slane %v295_v26, 1  ;;  %v312_v47 = vmul.f32 %v301_v35, %v295_v26 }
 0x324   :  { %324 = vrot.lane.b32.xlu2 %v309_v27, %s836_s6  ;;  %v313_v45 = vmul.f32 %v309_v27, %v306_v34 }
 0x32a   :  { %358 = vrot.lane.b32.xlu0 %v295_v26, %s834_s30  ;;  %360 = vrot.lane.b32.xlu1 %v309_v27, %s834_s30 }
 0x32c   :  { %342 = vrot.lane.b32.xlu2 %v309_v27, %s835_s5 }
 0x332   :  { %434 = vperm.xlu0 %781, %v368_v28   ;;  %406 = vperm.xlu1 %783, %v369_v36  }
 0x334   :  { %351 = vperm.xlu2 %782, %v267_v60  }
 0x33a   :  { %788 = vset.pattern.permute.xlu0 %v830_v9  ;;  %401 = vperm.xlu1 %783, %v368_v28  }
 0x33c   :  { %784 = vset.pattern.permute.xlu2 %v831_v10 }
 0x33d   :  { %420 = vperm.xlu2 %784, %v369_v36  }
 0x342   :  { %785 = vset.pattern.permute.xlu1 %v832_v11 }
 0x343   :  { %438 = vperm.xlu1 %785, %v369_v36  }
 0x345   :  { %416 = vperm.xlu2 %784, %v368_v28  }
 0x34b   :  { %787 = vset.pattern.permute.xlu1 %v833_v12 }
 0x34d   :  { %786 = vset.pattern.permute.xlu2 %v833_v12 }
 0x34e   :  { %456 = vperm.xlu2 %786, %v369_v36  }
 0x356   :  { %791 = vset.pattern.permute.xlu2 %v831_v10 }
 0x37e   :  { %v325_v37 = vpop.permute.xlu2 %324 }
 0x37f   :  { %v329_v43 = vmul.f32 %v325_v37, %v320_v31 }
 0x381   :  { %v331_v48 = vadd.f32 %v329_v43, %v313_v45 }
 0x386   :  { %v343_v40 = vpop.permute.xlu2 %342 }
 0x387   :  { %v347_v46 = vmul.f32 %v343_v40, %v338_v39 }
 0x389   :  { %v349_v53 = vadd.f32 %v347_v46, %v331_v48 }
 0x38e   :  { %v352_v49 = vpop.permute.xlu2 %351 }
 0x394   :  { %v341_v41 = vpop.permute.xlu1 %340  ;;  %v323_v42 = vpop.permute.xlu0 %322 }
 0x395   :  { %v328_v44 = vmul.f32 %v323_v42, %v316_v29  ;;  %v346_v54 = vmul.f32 %v341_v41, %v334_v38  ;;  %v574_v41 = vld [vmem:[#allocation2 + $0x58] sm:$0xff] }
 0x396   :  { %595 = vmatpush.msrb.mxu2 %v574_v41 }
 0x397   :  { %v330_v50 = vadd.f32 %v328_v44, %v312_v47  ;;  %v421_v0 = vpop.permute.xlu2 %420  ;;  %v573_v44 = vld [vmem:[#allocation2 + $0x50] sm:$0xff]  ;;  %v571_v47 = vld [vmem:[%s1015_s0 + $0xe] sm:$0x1] }
 0x398   :  { %596 = vmatpush.msrb.mxu2 %v573_v44 }
 0x399   :  { %v348_v57 = vadd.f32 %v346_v54, %v330_v50 }
 0x39c   :  { %v359_v51 = vpop.permute.xlu0 %358  ;;  %v361_v52 = vpop.permute.xlu1 %360 }
 0x39d   :  { %v364_v55 = vmul.f32 %v359_v51, %v352_v49  ;;  %v365_v56 = vmul.f32 %v361_v52, %v356_v32 }
 0x39f   :  { %v367_v58 = vadd.f32 %v365_v56, %v349_v53  ;;  %v366_v59 = vadd.f32 %v364_v55, %v348_v57  ;;  %v417_v3 = vpop.permute.xlu2 %416 }
 0x3a1   :  { %v375_v60 = vrot.slane %v367_v58, 7 }
 0x3a3   :  { %v376_v61 = vsel %vm39_vm1, %v375_v60, %v366_v59 }
 0x3a4   :  { %747 = vmatmul.msk.f32.vlgmr.msrb.gmra.mxu0 %vm72_vm3, %v376_v61  ;;  %v407_v1 = vpop.permute.xlu1 %406  ;;  %v435_v6 = vpop.permute.xlu0 %434 }
 0x3a8   :  { %v457_v13 = vpop.permute.xlu2 %456 }
 0x3ac   :  { %v402_v4 = vpop.permute.xlu1 %401 }
 0x3b5   :  { %v439_v14 = vpop.permute.xlu1 %438 }
 0x421   :  { %v396_v62 = vpop.f32.mrf.mxu0 }
 0x422   :  { %441 = vrot.lane.b32.xlu1 %v396_v62, %s835_s5  ;;  %423 = vrot.lane.b32.xlu0 %v396_v62, %s836_s6  ;;  %v410_v63 = vrot.slane %v396_v62, 1  ;;  %v413_v22 = vmul.f32 %v402_v4, %v396_v62 }
 0x424   :  { %443 = vrot.lane.b32.xlu2 %v410_v63, %s835_s5  ;;  %v414_v21 = vmul.f32 %v410_v63, %v407_v1 }
 0x42a   :  { %452 = vperm.xlu1 %787, %v368_v28   ;;  %425 = vrot.lane.b32.xlu0 %v410_v63, %s836_s6 }
 0x42c   :  { %459 = vrot.lane.b32.xlu2 %v396_v62, %s834_s30 }
 0x432   :  { %461 = vrot.lane.b32.xlu0 %v410_v63, %s834_s30  ;;  %789 = vset.pattern.permute.xlu1 %v831_v10 }
 0x433   :  { %521 = vperm.xlu1 %789, %v470_v7  }
 0x434   :  { %517 = vperm.xlu2 %791, %v469_v8  }
 0x43a   :  { %507 = vperm.xlu0 %788, %v470_v7  }
 0x43b   :  { %790 = vset.pattern.permute.xlu1 %v830_v9 }
 0x43c   :  { %502 = vperm.xlu1 %790, %v469_v8   ;;  %794 = vset.pattern.permute.xlu2 %v833_v12 }
 0x43d   :  { %557 = vperm.xlu2 %794, %v470_v7  }
 0x442   :  { %793 = vset.pattern.permute.xlu0 %v832_v11 }
 0x443   :  { %535 = vperm.xlu0 %793, %v469_v8  }
 0x444   :  { %792 = vset.pattern.permute.xlu1 %v832_v11 }
 0x445   :  { %539 = vperm.xlu1 %792, %v470_v7   ;;  %v673_v7 = vld [vmem:[%s1018_s3] sm:$0xf] }
 0x446   :  { %750 = vmatpush.msk.msrb.mxu3 %vm44_vm0, %v673_v7 }
 0x44d   :  { %795 = vset.pattern.permute.xlu1 %v830_v9  ;;  %v570_v9 = vld [vmem:[%s1015_s0 + $0x6] sm:$0x1] }
 0x47e   :  { %v444_v17 = vpop.permute.xlu2 %443 }
 0x47f   :  { %v448_v25 = vmul.f32 %v444_v17, %v439_v14 }
 0x486   :  { %v460_v27 = vpop.permute.xlu2 %459 }
 0x48e   :  { %v518_v40 = vpop.permute.xlu2 %517 }
 0x494   :  { %v424_v15 = vpop.permute.xlu0 %423  ;;  %v442_v16 = vpop.permute.xlu1 %441 }
 0x495   :  { %v429_v20 = vmul.f32 %v424_v15, %v417_v3  ;;  %v447_v29 = vmul.f32 %v442_v16, %v435_v6 }
 0x497   :  { %v431_v26 = vadd.f32 %v429_v20, %v413_v22  ;;  %v558_v43 = vpop.permute.xlu2 %557  ;;  %v837_v22 = vmov 1.0  }
 0x498   :  { %729 = vmatpush.msra.mxu0 %v837_v22 }
 0x499   :  { %v449_v33 = vadd.f32 %v447_v29, %v431_v26 }
 0x49a   :  { %730 = vmatpush.msra.mxu0 %v837_v22 }
 0x49c   :  { %v426_v18 = vpop.permute.xlu0 %425  ;;  %v453_v24 = vpop.permute.xlu1 %452 }
 0x49d   :  { %v430_v19 = vmul.f32 %v426_v18, %v421_v0  ;;  %v465_v30 = vmul.f32 %v460_v27, %v453_v24 }
 0x49f   :  { %v432_v23 = vadd.f32 %v430_v19, %v414_v21  ;;  %v467_v35 = vadd.f32 %v465_v30, %v449_v33 }
 0x4a1   :  { %v450_v31 = vadd.f32 %v448_v25, %v432_v23 }
 0x4a4   :  { %v462_v28 = vpop.permute.xlu0 %461 }
 0x4a5   :  { %v466_v32 = vmul.f32 %v462_v28, %v457_v13  ;;  %v522_v42 = vpop.permute.xlu1 %521 }
 0x4a7   :  { %v468_v34 = vadd.f32 %v466_v32, %v450_v31 }
 0x4a9   :  { %v476_v36 = vrot.slane %v468_v34, 7 }
 0x4ab   :  { %v477_v37 = vsel %vm39_vm1, %v476_v36, %v467_v35 }
 0x4ac   :  { %748 = vmatmul.msk.f32.vlgmr.msrb.gmra.mxu1 %vm72_vm3, %v477_v37  ;;  %v508_v45 = vpop.permute.xlu0 %507 }
 0x4ae   :  { %v503_v46 = vpop.permute.xlu1 %502 }
 0x4b5   :  { %v536_v49 = vpop.permute.xlu0 %535 }
 0x4b7   :  { %v540_v50 = vpop.permute.xlu1 %539 }
 0x529   :  { %v497_v38 = vpop.f32.mrf.mxu1 }
 0x52a   :  { %v511_v39 = vrot.slane %v497_v38, 1  ;;  %542 = vrot.lane.b32.xlu1 %v497_v38, %s835_s5  ;;  %524 = vrot.lane.b32.xlu0 %v497_v38, %s836_s6  ;;  %v514_v57 = vmul.f32 %v503_v46, %v497_v38 }
 0x52c   :  { %526 = vrot.lane.b32.xlu2 %v511_v39, %s836_s6  ;;  %v515_v55 = vmul.f32 %v511_v39, %v508_v45 }
 0x532   :  { %560 = vrot.lane.b32.xlu0 %v497_v38, %s834_s30  ;;  %562 = vrot.lane.b32.xlu1 %v511_v39, %s834_s30 }
 0x534   :  { %544 = vrot.lane.b32.xlu2 %v511_v39, %s835_s5 }
 0x53a   :  { %636 = vperm.xlu0 %793, %v570_v9   ;;  %608 = vperm.xlu1 %795, %v571_v47  }
 0x53c   :  { %553 = vperm.xlu2 %794, %v469_v8   ;;  %v671_v8 = vld [vmem:[%s1015_s0 + $0x7] sm:$0x1] }
 0x542   :  { %800 = vset.pattern.permute.xlu0 %v833_v12  ;;  %603 = vperm.xlu1 %795, %v570_v9  }
 0x544   :  { %796 = vset.pattern.permute.xlu2 %v831_v10 }
 0x545   :  { %622 = vperm.xlu2 %796, %v571_v47  }
 0x54a   :  { %797 = vset.pattern.permute.xlu1 %v832_v11 }
 0x54b   :  { %640 = vperm.xlu1 %797, %v571_v47  }
 0x54d   :  { %618 = vperm.xlu2 %796, %v570_v9  }
 0x553   :  { %799 = vset.pattern.permute.xlu1 %v833_v12 }
 0x555   :  { %798 = vset.pattern.permute.xlu2 %v833_v12  ;;  %v672_v12 = vld [vmem:[%s1015_s0 + $0xf] sm:$0x1] }
 0x556   :  { %658 = vperm.xlu2 %798, %v571_v47   ;;  %v676_v13 = vrot.slane %v672_v12, 7 }
 0x558   :  { %v677_v14 = vsel %vm39_vm1, %v676_v13, %v671_v8 }
 0x559   :  { %751 = vmatmul.msk.f32.vlgmr.msrb.gmra.mxu3 %vm41_vm2, %v677_v14 }
 0x586   :  { %v527_v48 = vpop.permute.xlu2 %526 }
 0x587   :  { %v531_v53 = vmul.f32 %v527_v48, %v522_v42 }
 0x589   :  { %v533_v58 = vadd.f32 %v531_v53, %v515_v55 }
 0x58e   :  { %v545_v10 = vpop.permute.xlu2 %544 }
 0x58f   :  { %v549_v56 = vmul.f32 %v545_v10, %v540_v50 }
 0x591   :  { %v551_v63 = vadd.f32 %v549_v56, %v533_v58 }
 0x596   :  { %v554_v59 = vpop.permute.xlu2 %553 }
 0x59c   :  { %v543_v51 = vpop.permute.xlu1 %542  ;;  %v525_v52 = vpop.permute.xlu0 %524 }
 0x59d   :  { %v530_v54 = vmul.f32 %v525_v52, %v518_v40  ;;  %v548_v0 = vmul.f32 %v543_v51, %v536_v49 }
 0x59f   :  { %v532_v60 = vadd.f32 %v530_v54, %v514_v57  ;;  %v623_v17 = vpop.permute.xlu2 %622 }
 0x5a1   :  { %v550_v11 = vadd.f32 %v548_v0, %v532_v60 }
 0x5a4   :  { %v561_v61 = vpop.permute.xlu0 %560  ;;  %v563_v62 = vpop.permute.xlu1 %562 }
 0x5a5   :  { %v566_v1 = vmul.f32 %v561_v61, %v554_v59  ;;  %v567_v2 = vmul.f32 %v563_v62, %v558_v43 }
 0x5a7   :  { %v569_v3 = vadd.f32 %v567_v2, %v551_v63  ;;  %v568_v4 = vadd.f32 %v566_v1, %v550_v11  ;;  %v619_v19 = vpop.permute.xlu2 %618 }
 0x5a9   :  { %v577_v5 = vrot.slane %v569_v3, 7 }
 0x5ab   :  { %v578_v6 = vsel %vm39_vm1, %v577_v5, %v568_v4 }
 0x5ac   :  { %749 = vmatmul.msk.f32.vlgmr.msrb.gmra.mxu2 %vm72_vm3, %v578_v6  ;;  %v609_v18 = vpop.permute.xlu1 %608  ;;  %v637_v21 = vpop.permute.xlu0 %636 }
 0x5b0   :  { %v659_v23 = vpop.permute.xlu2 %658 }
 0x5b4   :  { %v604_v20 = vpop.permute.xlu1 %603 }
 0x5bd   :  { %v641_v24 = vpop.permute.xlu1 %640 }
 0x62f   :  { %v598_v15 = vpop.f32.mrf.mxu2 }
 0x630   :  { %v612_v16 = vrot.slane %v598_v15, 1  ;;  %643 = vrot.lane.b32.xlu1 %v598_v15, %s835_s5  ;;  %625 = vrot.lane.b32.xlu0 %v598_v15, %s836_s6  ;;  %v615_v31 = vmul.f32 %v604_v20, %v598_v15 }
 0x632   :  { %645 = vrot.lane.b32.xlu2 %v612_v16, %s835_s5  ;;  %v616_v32 = vmul.f32 %v612_v16, %v609_v18 }
 0x638   :  { %654 = vperm.xlu1 %799, %v570_v9   ;;  %627 = vrot.lane.b32.xlu0 %v612_v16, %s836_s6  ;;  %v700_v9 = vpop.f32.mrf.mxu3 }
 0x639   :  { %v704_v42 = vrot.slane %v700_v9, 1 }
 0x63a   :  { %661 = vrot.lane.b32.xlu2 %v598_v15, %s834_s30 }
 0x640   :  { %663 = vrot.lane.b32.xlu0 %v612_v16, %s834_s30 }
 0x68c   :  { %v646_v27 = vpop.permute.xlu2 %645 }
 0x68d   :  { %v650_v37 = vmul.f32 %v646_v27, %v641_v24 }
 0x694   :  { %v662_v36 = vpop.permute.xlu2 %661 }
 0x6a2   :  { %v626_v25 = vpop.permute.xlu0 %625  ;;  %v644_v26 = vpop.permute.xlu1 %643 }
 0x6a3   :  { %v631_v29 = vmul.f32 %v626_v25, %v619_v19  ;;  %v649_v38 = vmul.f32 %v644_v26, %v637_v21 }
 0x6a5   :  { %v633_v34 = vadd.f32 %v631_v29, %v615_v31 }
 0x6a7   :  { %v651_v41 = vadd.f32 %v649_v38, %v633_v34 }
 0x6aa   :  { %v628_v28 = vpop.permute.xlu0 %627  ;;  %v655_v33 = vpop.permute.xlu1 %654 }
 0x6ab   :  { %v632_v30 = vmul.f32 %v628_v28, %v623_v17  ;;  %v667_v39 = vmul.f32 %v662_v36, %v655_v33 }
 0x6ad   :  { %v634_v35 = vadd.f32 %v632_v30, %v616_v32  ;;  %v669_v45 = vadd.f32 %v667_v39, %v651_v41 }
 0x6af   :  { %v652_v43 = vadd.f32 %v650_v37, %v634_v35  ;;  %v707_v48 = vmul.f32 %v700_v9, %v669_v45 }
 0x6b2   :  { %v664_v40 = vpop.permute.xlu0 %663 }
 0x6b3   :  { %v668_v44 = vmul.f32 %v664_v40, %v659_v23 }
 0x6b5   :  { %v670_v46 = vadd.f32 %v668_v44, %v652_v43 }
 0x6b7   :  { %v708_v47 = vmul.f32 %v704_v42, %v670_v46 }
 0x6b9   :  { %v711_v49 = vrot.slane %v708_v47, 7 }
 0x6bb   :  { %v712_v50 = vsel %vm39_vm1, %v711_v49, %v707_v48 }
 0x6bc   :  { %752 = vmatmul.msk.f32.vlgmr.msra.gmra.mxu0 %vm72_vm3, %v712_v50 }
 0x739   :  { %v732_v10 = vpop.f32.mrf.mxu0 }
 0x73a   :  { %736 = vst.msk [vmem:[%s1019_s4] sm:$0x3] %vm735_vm4, %v732_v10 }
 0x73b   :  { %741 = vsyncpa [#allocation3], 1 }

</bundles_post_ra>
